<compile_context>
chip_gen: v7x
topology: tpu7x:2x2x1
jax: 0.10.0
libtpu: 0.0.40
codegen_flags: <defaults>
</compile_context>

<pallas_src>
import jax
import jax.numpy as jnp
from jax.experimental import pallas as pl
from jax.experimental.pallas import tpu as pltpu

# Problem sizes implied by the module (CartPole-like env):
N_F = 4        # env.observation_space.shape[0]
N_A = 2        # env.action_space.n
HIDDEN = 20    # fc1 output features

# Padded (lane-dense) sizes used inside the kernel.
H_PAD = 128    # hidden padded to a full 128-lane vreg row
A_PAD = 128    # fc2 output lanes (padded cols masked off in the softmax)

BATCH = 128        # small-batch demo (gridless path)
LARGE_BATCH = 1024  # large-batch demo (batch-grid path, v7x megacore)
BATCH_TILE = 256

_NEG_BIG = -1e30   # bias for padded action columns -> exp() == 0 -> prob 0

COMPUTE_DTYPE = jnp.bfloat16   # MXU operand dtype; accumulation stays f32


def actor_kernel(x_ref, w1_ref, b1_ref, w2_ref, b2_ref, out_ref):
    # fc1 + ReLU: bf16 operands on the MXU, f32 accumulation; bias/relu in f32.
    h = jnp.dot(x_ref[...], w1_ref[...], preferred_element_type=jnp.float32)
    h = jnp.maximum(h + b1_ref[...], 0.0)                      # [bt, H_PAD] f32

    # fc2: padded action columns carry a -1e30 f32 bias -> exp underflows to 0.
    logits = jnp.dot(h.astype(w2_ref.dtype), w2_ref[...],
                     preferred_element_type=jnp.float32) + b2_ref[...]

    # Numerically stable row softmax with EXACT division -> rows sum to 1.
    m = jnp.max(logits, axis=1, keepdims=True)
    e = jnp.exp(logits - m)
    denom = jnp.sum(e, axis=1, keepdims=True)
    probs = e / denom                                          # [bt, A_PAD] f32

    # Store only the real action columns (small masked store; no padded slab).
    out_ref[...] = probs[:, :N_A].astype(out_ref.dtype)


def _cost_estimate(B, arrays):
    bytes_accessed = (sum(int(a.size) * a.dtype.itemsize for a in arrays)
                      + B * N_A * 4)
    return pl.CostEstimate(
        flops=2 * B * (N_F * H_PAD + H_PAD * A_PAD),
        transcendentals=B * A_PAD,
        bytes_accessed=bytes_accessed,
    )


def actor_forward(x, w1_pad, b1_pad, w2_pad, b2_pad, *, batch_tile=None):
    """x: [B, N_F]; w1_pad: [N_F, H_PAD] bf16; b1_pad: [1, H_PAD] f32;
    w2_pad: [H_PAD, A_PAD] bf16; b2_pad: [1, A_PAD] f32. Returns probs [B, N_A].

    batch_tile=None  -> gridless, whole arrays in VMEM (v5e/v6e, small batch).
    batch_tile=int   -> grid over batch, dimension_semantics=("parallel",) so
                        v7x shards row tiles across both TensorCores.
    """
    B = x.shape[0]
    x = x.astype(w1_pad.dtype)   # bf16 operand for the MXU
    inputs = (x, w1_pad, b1_pad, w2_pad, b2_pad)
    out_shape = jax.ShapeDtypeStruct((B, N_A), jnp.float32)
    cost = _cost_estimate(B, inputs)

    if batch_tile is None or batch_tile >= B:
        # Single-shot: no grid, no pipeline machinery (total footprint ~100 KB).
        return pl.pallas_call(
            actor_kernel,
            out_shape=out_shape,
            in_specs=[pl.BlockSpec(memory_space=pltpu.MemorySpace.VMEM)] * 5,
            out_specs=pl.BlockSpec(memory_space=pltpu.MemorySpace.VMEM),
            cost_estimate=cost,
        )(*inputs)

    assert B % batch_tile == 0, "batch must be divisible by batch_tile"
    return pl.pallas_call(
        actor_kernel,
        out_shape=out_shape,
        grid=(B // batch_tile,),
        in_specs=[
            pl.BlockSpec((batch_tile, N_F), lambda i: (i, 0)),
            pl.BlockSpec((N_F, H_PAD), lambda i: (0, 0)),
            pl.BlockSpec((1, H_PAD), lambda i: (0, 0)),
            pl.BlockSpec((H_PAD, A_PAD), lambda i: (0, 0)),
            pl.BlockSpec((1, A_PAD), lambda i: (0, 0)),
        ],
        out_specs=pl.BlockSpec((batch_tile, N_A), lambda i: (i, 0)),
        compiler_params=pltpu.CompilerParams(
            dimension_semantics=("parallel",)),
        cost_estimate=cost,
    )(*inputs)


def init_params(key):
    """Mirror initialize_weights(): W ~ N(0, 0.1), b = 0.1.
    PyTorch stores weight as [out, in]; we keep the transposed [in, out] form."""
    k1, k2 = jax.random.split(key)
    w1 = 0.1 * jax.random.normal(k1, (N_F, HIDDEN), dtype=jnp.float32)
    b1 = jnp.full((HIDDEN,), 0.1, dtype=jnp.float32)
    w2 = 0.1 * jax.random.normal(k2, (HIDDEN, N_A), dtype=jnp.float32)
    b2 = jnp.full((N_A,), 0.1, dtype=jnp.float32)
    return w1, b1, w2, b2


def pad_params(w1, b1, w2, b2, compute_dtype=COMPUTE_DTYPE):
    """Zero-pad hidden dim to H_PAD and action dim to A_PAD.
    Weights are stored in bf16 (MXU operands); biases stay f32.
    Padded hidden units: zero weight/bias -> relu(0) = 0 -> no contribution.
    Padded action columns: -1e30 f32 bias -> exp underflows -> prob exactly 0."""
    w1_pad = (jnp.zeros((N_F, H_PAD), jnp.float32)
              .at[:, :HIDDEN].set(w1).astype(compute_dtype))
    b1_pad = jnp.zeros((1, H_PAD), jnp.float32).at[:, :HIDDEN].set(b1)
    w2_pad = (jnp.zeros((H_PAD, A_PAD), jnp.float32)
              .at[:HIDDEN, :N_A].set(w2).astype(compute_dtype))
    b2_pad = jnp.full((1, A_PAD), _NEG_BIG, jnp.float32).at[:, :N_A].set(b2)
    return w1_pad, b1_pad, w2_pad, b2_pad


def reference_forward(x, w1, b1, w2, b2):
    """Exact f32 reference of the PyTorch forward."""
    h = jnp.maximum(x @ w1 + b1, 0.0)
    return jax.nn.softmax(h @ w2 + b2, axis=1)


def reference_forward_matched(x, w1, b1, w2, b2, compute_dtype=COMPUTE_DTYPE):
    """Reference with the same bf16-operand / f32-accumulate casts as the kernel."""
    xb = x.astype(compute_dtype)
    h = jnp.dot(xb, w1.astype(compute_dtype),
                preferred_element_type=jnp.float32) + b1
    h = jnp.maximum(h, 0.0)
    logits = jnp.dot(h.astype(compute_dtype), w2.astype(compute_dtype),
                     preferred_element_type=jnp.float32) + b2
    return jax.nn.softmax(logits, axis=1)


if __name__ == "__main__":
    key = jax.random.PRNGKey(0)
    kx, kp = jax.random.split(key)
    w1, b1, w2, b2 = init_params(kp)
    w1_p, b1_p, w2_p, b2_p = pad_params(w1, b1, w2, b2)

    fwd = jax.jit(actor_forward, static_argnames=("batch_tile",))

    # --- small batch: gridless single invocation (v5e/v6e, small-batch v7x) ---
    x = jax.random.normal(kx, (BATCH, N_F), dtype=jnp.float32)
    probs = jax.block_until_ready(fwd(x, w1_p, b1_p, w2_p, b2_p))
    assert probs.shape == (BATCH, N_A)
    ref_matched = reference_forward_matched(x, w1, b1, w2, b2)
    ref_f32 = reference_forward(x, w1, b1, w2, b2)
    assert jnp.allclose(probs, ref_matched, atol=1e-4, rtol=1e-4)      # same-cast ref
    assert jnp.allclose(probs, ref_f32, atol=3e-2)                     # bf16 vs f32 ops
    assert jnp.allclose(jnp.sum(probs, axis=1), 1.0, atol=1e-5)        # exact divide

    # --- large batch: batch grid, parallel semantics (v7x two-TensorCore) ---
    xl = jax.random.normal(kx, (LARGE_BATCH, N_F), dtype=jnp.float32)
    probs_l = jax.block_until_ready(
        fwd(xl, w1_p, b1_p, w2_p, b2_p, batch_tile=BATCH_TILE))
    assert probs_l.shape == (LARGE_BATCH, N_A)
    ref_l = reference_forward_matched(xl, w1, b1, w2, b2)
    assert jnp.allclose(probs_l, ref_l, atol=1e-4, rtol=1e-4)
    assert jnp.allclose(jnp.sum(probs_l, axis=1), 1.0, atol=1e-5)

    print("KERNEL_OK")
</pallas_src>

<mosaic_0001>
module attributes {stable_mosaic.version = 11 : i64} {
  func.func @actor_kernel(%arg0: memref<128x4xbf16, #tpu.memory_space<vmem>>, %arg1: memref<4x128xbf16, #tpu.memory_space<vmem>>, %arg2: memref<1x128xf32, #tpu.memory_space<vmem>>, %arg3: memref<128x128xbf16, #tpu.memory_space<vmem>>, %arg4: memref<1x128xf32, #tpu.memory_space<vmem>>, %arg5: memref<128x2xf32, #tpu.memory_space<vmem>>) attributes {dimension_semantics = [], scalar_prefetch = 0 : i64, scratch_operands = 0 : i64, tpu.core_type = #tpu.core_type<tc>} {
    %c0 = arith.constant 0 : index
    %c0_0 = arith.constant 0 : index
    %0 = vector.load %arg0[%c0, %c0_0] : memref<128x4xbf16, #tpu.memory_space<vmem>>, vector<128x4xbf16>
    %c0_1 = arith.constant 0 : index
    %c0_2 = arith.constant 0 : index
    %1 = vector.load %arg1[%c0_1, %c0_2] : memref<4x128xbf16, #tpu.memory_space<vmem>>, vector<4x128xbf16>
    %cst = arith.constant dense<0.000000e+00> : vector<128x128xf32>
    %2 = tpu.matmul %0, %1, %cst {dimension_numbers = #tpu.dot_dimension_numbers<[1], [0], [0], [1], [0, 0, 1, 1], [], []>} : vector<128x4xbf16>, vector<4x128xbf16>, vector<128x128xf32> -> vector<128x128xf32>
    %c0_3 = arith.constant 0 : index
    %c0_4 = arith.constant 0 : index
    %3 = vector.load %arg2[%c0_3, %c0_4] : memref<1x128xf32, #tpu.memory_space<vmem>>, vector<1x128xf32>
    %4 = vector.broadcast %3 : vector<1x128xf32> to vector<128x128xf32>
    %5 = arith.addf %2, %4 : vector<128x128xf32>
    %cst_5 = arith.constant 0.000000e+00 : f32
    %6 = vector.broadcast %cst_5 : f32 to vector<128x128xf32>
    %7 = arith.maximumf %5, %6 : vector<128x128xf32>
    %8 = arith.truncf %7 : vector<128x128xf32> to vector<128x128xbf16>
    %c0_6 = arith.constant 0 : index
    %c0_7 = arith.constant 0 : index
    %9 = vector.load %arg3[%c0_6, %c0_7] : memref<128x128xbf16, #tpu.memory_space<vmem>>, vector<128x128xbf16>
    %cst_8 = arith.constant dense<0.000000e+00> : vector<128x128xf32>
    %10 = tpu.matmul %8, %9, %cst_8 {dimension_numbers = #tpu.dot_dimension_numbers<[1], [0], [0], [1], [0, 0, 1, 1], [], []>} : vector<128x128xbf16>, vector<128x128xbf16>, vector<128x128xf32> -> vector<128x128xf32>
    %c0_9 = arith.constant 0 : index
    %c0_10 = arith.constant 0 : index
    %11 = vector.load %arg4[%c0_9, %c0_10] : memref<1x128xf32, #tpu.memory_space<vmem>>, vector<1x128xf32>
    %12 = vector.broadcast %11 : vector<1x128xf32> to vector<128x128xf32>
    %13 = arith.addf %10, %12 : vector<128x128xf32>
    %cst_11 = arith.constant dense<0xFF800000> : vector<128xf32>
    %14 = vector.multi_reduction <maximumf>, %13, %cst_11 [1] : vector<128x128xf32> to vector<128xf32>
    %15 = vector.shape_cast %14 : vector<128xf32> to vector<128x1xf32>
    %16 = vector.broadcast %15 : vector<128x1xf32> to vector<128x128xf32>
    %17 = arith.subf %13, %16 : vector<128x128xf32>
    %18 = math.exp %17 : vector<128x128xf32>
    %cst_12 = arith.constant dense<0.000000e+00> : vector<128xf32>
    %19 = vector.multi_reduction <add>, %18, %cst_12 [1] : vector<128x128xf32> to vector<128xf32>
    %20 = vector.shape_cast %19 : vector<128xf32> to vector<128x1xf32>
    %21 = vector.broadcast %20 : vector<128x1xf32> to vector<128x128xf32>
    %22 = arith.divf %18, %21 : vector<128x128xf32>
    %23 = vector.extract_strided_slice %22 {offsets = [0, 0], sizes = [128, 2], strides = [1, 1]} : vector<128x128xf32> to vector<128x2xf32>
    %c0_13 = arith.constant 0 : index
    %c0_14 = arith.constant 0 : index
    %24 = vector.load %arg5[%c0_13, %c0_14] : memref<128x2xf32, #tpu.memory_space<vmem>>, vector<128x2xf32>
    tpu.vector_store %arg5[%c0_13, %c0_14], %23 {strides = array<i32>} : memref<128x2xf32, #tpu.memory_space<vmem>>, vector<128x2xf32>,
    return
  }
}

</mosaic_0001>

<bundles_post_ra>
// kernel: actor_forward.1
= control target key start
LH: loop header
LB: loop body
LE: loop exit
PB: predicated region body
PF: predicated region fallthrough
CT: control target
= control target key end

     0   :  { %vm110_vm0 = vcmask 1041408   ;;  %vm85_vm1 = vcmask 31744   ;;  %vm547_vm2 = vcmask 15360   ;;  %s1021_s1 = inlined_call_operand.vmem [shape: bf16[4,128], index: 1, kind: input, shape index: {}]   ;;  %s1022_s0 = inlined_call_operand.vmem [shape: bf16[128,4], index: 0, kind: input, shape index: {}]   ;;  %s1023_s3 = inlined_call_operand.vmem [shape: bf16[128,128], index: 3, kind: input, shape index: {}]   ;;  %s1024_s2 = inlined_call_operand.vmem [shape: f32[1,128], index: 2, kind: input, shape index: {}]   ;;  %s1025_s4 = inlined_call_operand.vmem [shape: f32[1,128], index: 4, kind: input, shape index: {}]   ;;  %s1026_s5 = inlined_call_operand.vmem [shape: f32[128,2], index: 5, kind: output, shape index: {}]  }
   0x1   :  { %v37_v0 = vld [vmem:[%s1021_s1] sm:$0x3]  ;;  %v687_v3 = vld [vmem:[%s1022_s0 + $0x8] sm:$0xff]   ;;  %v688_v4 = vld [vmem:[%s1022_s0 + $0x10] sm:$0xff]  }
   0x2   :  { %685 = vmatprep.subr.msk.bf16.mxu0 %vm110_vm0, %v37_v0  ;;  %v112_v1 = vsel %vm110_vm0, %v37_v0, 0  ;;  %v686_v2 = vld [vmem:[%s1022_s0] sm:$0xff]   ;;  %v689_v5 = vld [vmem:[%s1022_s0 + $0x18] sm:$0xff]   ;;  %v695_v8 = vld [vmem:[%s1023_s3 + $0x8] sm:$0xff]  }
   0x3   :  { %620 = vmatpush3.bf16.msra.mxu0 %v112_v1  ;;  %621 = vmatprep.mubr.msk.bf16.mxu0 %vm85_vm1, %v686_v2  ;;  %v690_v6 = vld [vmem:[%s1022_s0 + $0x20] sm:$0xff]   ;;  %v696_v9 = vld [vmem:[%s1023_s3 + $0x10] sm:$0xff]   ;;  %v691_v10 = vld [vmem:[%s1022_s0 + $0x28] sm:$0xff]  }
   0x4   :  { %v694_v7 = vld [vmem:[%s1023_s3] sm:$0xff]   ;;  %v697_v11 = vld [vmem:[%s1023_s3 + $0x18] sm:$0xff]   ;;  %v692_v12 = vld [vmem:[%s1022_s0 + $0x30] sm:$0xff]  }
   0x5   :  { %637 = vmatprep.subr.bf16.mxu0 %v694_v7  ;;  %669 = vmatprep.subr.bf16.mxu1 %v694_v7  ;;  %v698_v13 = vld [vmem:[%s1023_s3 + $0x20] sm:$0xff]   ;;  %v693_v14 = vld [vmem:[%s1022_s0 + $0x38] sm:$0xff]   ;;  %v699_v15 = vld [vmem:[%s1023_s3 + $0x28] sm:$0xff]  }
   0x6   :  { %622 = vmatmul.mubr.msk.bf16.vlgmr.msra.gmra.mrb[0].mxu0 %vm85_vm1, %v687_v3  ;;  %677 = vmatpush3.bf16.msra.mxu1 %v694_v7  ;;  %v700_v16 = vld [vmem:[%s1023_s3 + $0x30] sm:$0xff]   ;;  %v701_v17 = vld [vmem:[%s1023_s3 + $0x38] sm:$0xff]   ;;  %v568_v18 = vld [vmem:[%s1024_s2] ss:$0 sm:$0xff] }
   0x7   :  { %625 = vmatprep.mubr.msk.bf16.mxu0 %vm85_vm1, %v688_v4  ;;  %638 = vmatpush3.bf16.msra.mxu0 %v694_v7 }
   0x8   :  { %639 = vmatprep.subr.bf16.mxu0 %v695_v8  ;;  %670 = vmatprep.subr.bf16.mxu1 %v695_v8 }
   0xa   :  { %678 = vmatpush3.bf16.msra.mxu1 %v695_v8 }
   0xb   :  { %640 = vmatpush3.bf16.msra.mxu0 %v695_v8  ;;  %671 = vmatprep.subr.bf16.mxu1 %v696_v9 }
   0xc   :  { %641 = vmatprep.subr.bf16.mxu0 %v696_v9 }
   0xe   :  { %626 = vmatmul.mubr.msk.bf16.gmra.mrb[4].mxu0 %vm85_vm1, %v689_v5  ;;  %679 = vmatpush3.bf16.msra.mxu1 %v696_v9 }
   0xf   :  { %629 = vmatprep.mubr.msk.bf16.mxu0 %vm85_vm1, %v690_v6  ;;  %642 = vmatpush3.bf16.msra.mxu0 %v696_v9 }
  0x10   :  { %643 = vmatprep.subr.bf16.mxu0 %v697_v11  ;;  %672 = vmatprep.subr.bf16.mxu1 %v697_v11 }
  0x12   :  { %680 = vmatpush3.bf16.msra.mxu1 %v697_v11 }
  0x13   :  { %644 = vmatpush3.bf16.msra.mxu0 %v697_v11  ;;  %673 = vmatprep.subr.bf16.mxu1 %v698_v13  ;;  %v585_v11 = vld [vmem:[%s1025_s4] ss:$0 sm:$0xff] }
  0x14   :  { %645 = vmatprep.subr.bf16.mxu0 %v698_v13 }
  0x16   :  { %630 = vmatmul.mubr.msk.bf16.gmra.mrb[8].mxu0 %vm85_vm1, %v691_v10  ;;  %681 = vmatpush3.bf16.msra.mxu1 %v698_v13 }
  0x17   :  { %633 = vmatprep.mubr.msk.bf16.mxu0 %vm85_vm1, %v692_v12  ;;  %646 = vmatpush3.bf16.msra.mxu0 %v698_v13 }
  0x18   :  { %647 = vmatprep.subr.bf16.mxu0 %v699_v15  ;;  %674 = vmatprep.subr.bf16.mxu1 %v699_v15 }
  0x1a   :  { %682 = vmatpush3.bf16.msra.mxu1 %v699_v15 }
  0x1b   :  { %648 = vmatpush3.bf16.msra.mxu0 %v699_v15  ;;  %675 = vmatprep.subr.bf16.mxu1 %v700_v16 }
  0x1c   :  { %649 = vmatprep.subr.bf16.mxu0 %v700_v16 }
  0x1e   :  { %634 = vmatmul.mubr.msk.bf16.gmra.mrb[12].mxu0 %vm85_vm1, %v693_v14  ;;  %683 = vmatpush3.bf16.msra.mxu1 %v700_v16 }
  0x1f   :  { %650 = vmatpush3.bf16.msra.mxu0 %v700_v16  ;;  %676 = vmatprep.subr.bf16.mxu1 %v701_v17 }
  0x20   :  { %651 = vmatprep.subr.bf16.mxu0 %v701_v17 }
  0x22   :  { %684 = vmatpush3.bf16.msra.mxu1 %v701_v17 }
  0x23   :  { %652 = vmatpush3.bf16.msra.mxu0 %v701_v17 }
  0xd9   :  { %v623_v19 = vpop.f32.mrb[0].mxu0 }
  0xda   :  { %v157_v20 = vadd.f32 %v623_v19, %v568_v18  ;;  %v148_v21 = vpop.f32.mrb[1].mxu0 }
  0xdb   :  { %v149_v22 = vadd.f32 %v568_v18, %v148_v21  ;;  %v624_v23 = vpop.f32.mrb[2].mxu0 }
  0xdc   :  { %v160_v24 = vadd.f32 %v624_v23, %v568_v18  ;;  %v151_v25 = vpop.f32.mrb[3].mxu0  ;;  %v213_v27 = vmax.f32 %v157_v20, 0.0 }
  0xdd   :  { %v152_v26 = vadd.f32 %v568_v18, %v151_v25  ;;  %v211_v29 = vmax.f32 %v149_v22, 0.0 }
  0xde   :  { %v214_v28 = vmax.f32 %v160_v24, 0.0 }
  0xdf   :  { %v212_v30 = vmax.f32 %v152_v26, 0.0 }
  0xe0   :  { %v228_v31 = vpack.c.bf16 %v214_v28, %v213_v27 }
  0xe1   :  { %v227_v32 = vpack.c.bf16 %v212_v30, %v211_v29  ;;  %v627_v33 = vpop.f32.mrb[4].mxu0 }
  0xe2   :  { %v173_v34 = vadd.f32 %v627_v33, %v568_v18  ;;  %v164_v35 = vpop.f32.mrb[5].mxu0 }
  0xe3   :  { %v165_v36 = vadd.f32 %v568_v18, %v164_v35  ;;  %v628_v37 = vpop.f32.mrb[6].mxu0  ;;  %653 = vmatprep.mubr.bf16.mxu0 %v227_v32 }
  0xe4   :  { %v217_v38 = vmax.f32 %v173_v34, 0.0  ;;  %v176_v39 = vadd.f32 %v628_v37, %v568_v18  ;;  %v167_v40 = vpop.f32.mrb[7].mxu0  ;;  %654 = vmatmul.mubr.bf16.vlgmr.msra.gmra.mrb[16].mxu0 %v228_v31 }
  0xe5   :  { %v168_v41 = vadd.f32 %v568_v18, %v167_v40  ;;  %v215_v43 = vmax.f32 %v165_v36, 0.0 }
  0xe6   :  { %v218_v42 = vmax.f32 %v176_v39, 0.0 }
  0xe7   :  { %v216_v44 = vmax.f32 %v168_v41, 0.0 }
  0xe8   :  { %v230_v45 = vpack.c.bf16 %v218_v42, %v217_v38 }
  0xe9   :  { %v631_v46 = vpop.f32.mrb[8].mxu0  ;;  %v229_v47 = vpack.c.bf16 %v216_v44, %v215_v43 }
  0xea   :  { %v189_v48 = vadd.f32 %v631_v46, %v568_v18  ;;  %v180_v49 = vpop.f32.mrb[9].mxu0 }
  0xeb   :  { %v181_v50 = vadd.f32 %v568_v18, %v180_v49  ;;  %v632_v51 = vpop.f32.mrb[10].mxu0  ;;  %657 = vmatprep.mubr.bf16.mxu1 %v229_v47 }
  0xec   :  { %v221_v52 = vmax.f32 %v189_v48, 0.0  ;;  %v192_v53 = vadd.f32 %v632_v51, %v568_v18  ;;  %v183_v54 = vpop.f32.mrb[11].mxu0  ;;  %658 = vmatmul.mubr.bf16.vlgmr.msra.gmra.mrb[0].mxu1 %v230_v45 }
  0xed   :  { %v184_v55 = vadd.f32 %v568_v18, %v183_v54  ;;  %v219_v57 = vmax.f32 %v181_v50, 0.0 }
  0xee   :  { %v222_v56 = vmax.f32 %v192_v53, 0.0 }
  0xef   :  { %v220_v58 = vmax.f32 %v184_v55, 0.0 }
  0xf0   :  { %v232_v59 = vpack.c.bf16 %v222_v56, %v221_v52 }
  0xf1   :  { %v231_v60 = vpack.c.bf16 %v220_v58, %v219_v57  ;;  %v635_v61 = vpop.f32.mrb[12].mxu0 }
  0xf2   :  { %v205_v62 = vadd.f32 %v635_v61, %v568_v18  ;;  %v196_v63 = vpop.f32.mrb[13].mxu0 }
  0xf3   :  { %v197_v0 = vadd.f32 %v568_v18, %v196_v63  ;;  %v636_v1 = vpop.f32.mrb[14].mxu0  ;;  %661 = vmatprep.mubr.bf16.mxu1 %v231_v60 }
  0xf4   :  { %v225_v2 = vmax.f32 %v205_v62, 0.0  ;;  %v208_v3 = vadd.f32 %v636_v1, %v568_v18  ;;  %v199_v4 = vpop.f32.mrb[15].mxu0  ;;  %662 = vmatmul.mubr.bf16.gmra.mrb[4].mxu1 %v232_v59 }
  0xf5   :  { %v200_v5 = vadd.f32 %v568_v18, %v199_v4  ;;  %v223_v7 = vmax.f32 %v197_v0, 0.0 }
  0xf6   :  { %v226_v6 = vmax.f32 %v208_v3, 0.0 }
  0xf7   :  { %v224_v8 = vmax.f32 %v200_v5, 0.0 }
  0xf8   :  { %v234_v9 = vpack.c.bf16 %v226_v6, %v225_v2 }
  0xf9   :  { %v233_v10 = vpack.c.bf16 %v224_v8, %v223_v7 }
  0xfb   :  { %665 = vmatprep.mubr.bf16.mxu1 %v233_v10 }
  0xfc   :  { %666 = vmatmul.mubr.bf16.gmra.mrb[8].mxu1 %v234_v9 }
 0x1b7   :  { %v655_v12 = vpop.f32.mrb[16].mxu0 }
 0x1b8   :  { %v349_v13 = vadd.f32 %v655_v12, %v585_v11  ;;  %v340_v14 = vpop.f32.mrb[17].mxu0 }
 0x1b9   :  { %v341_v15 = vadd.f32 %v585_v11, %v340_v14  ;;  %v656_v16 = vpop.f32.mrb[18].mxu0 }
 0x1ba   :  { %407 = vmax.xlane.f32.xlu1 %v349_v13  ;;  %v343_v17 = vpop.f32.mrb[19].mxu0  ;;  %v352_v18 = vadd.f32 %v656_v16, %v585_v11 }
 0x1bb   :  { %403 = vmax.xlane.f32.xlu0 %v341_v15  ;;  %v344_v19 = vadd.f32 %v585_v11, %v343_v17 }
 0x1be   :  { %409 = vmax.xlane.f32.xlu1 %v352_v18 }
 0x1bf   :  { %v659_v20 = vpop.f32.mrb[0].mxu1  ;;  %405 = vmax.xlane.f32.xlu0 %v344_v19 }
 0x1c0   :  { %v365_v21 = vadd.f32 %v659_v20, %v585_v11  ;;  %v356_v22 = vpop.f32.mrb[1].mxu1 }
 0x1c1   :  { %v660_v23 = vpop.f32.mrb[2].mxu1  ;;  %v357_v26 = vadd.f32 %v585_v11, %v356_v22 }
 0x1c2   :  { %v368_v24 = vadd.f32 %v660_v23, %v585_v11  ;;  %v359_v25 = vpop.f32.mrb[3].mxu1 }
 0x1c3   :  { %415 = vmax.xlane.f32.xlu0 %v365_v21  ;;  %v360_v27 = vadd.f32 %v585_v11, %v359_v25 }
 0x1c4   :  { %417 = vmax.xlane.f32.xlu1 %v368_v24 }
 0x1c7   :  { %v663_v28 = vpop.f32.mrb[4].mxu1  ;;  %411 = vmax.xlane.f32.xlu0 %v357_v26 }
 0x1c8   :  { %v861_v29 = vadd.f32 %v663_v28, %v585_v11  ;;  %v372_v30 = vpop.f32.mrb[5].mxu1  ;;  %413 = vmax.xlane.f32.xlu1 %v360_v27 }
 0x1c9   :  { %v664_v31 = vpop.f32.mrb[6].mxu1  ;;  %v867_v34 = vadd.f32 %v585_v11, %v372_v30 }
 0x1ca   :  { %v863_v32 = vadd.f32 %v664_v31, %v585_v11  ;;  %v375_v33 = vpop.f32.mrb[7].mxu1 }
 0x1cb   :  { %423 = vmax.xlane.f32.xlu0 %v861_v29  ;;  %v869_v35 = vadd.f32 %v585_v11, %v375_v33 }
 0x1cc   :  { %425 = vmax.xlane.f32.xlu1 %v863_v32 }
 0x1cf   :  { %v667_v36 = vpop.f32.mrb[8].mxu1  ;;  %419 = vmax.xlane.f32.xlu0 %v867_v34 }
 0x1d0   :  { %v388_v37 = vpop.f32.mrb[9].mxu1  ;;  %421 = vmax.xlane.f32.xlu1 %v869_v35  ;;  %v878_v42 = vadd.f32 %v667_v36, %v585_v11 }
 0x1d1   :  { %v873_v38 = vadd.f32 %v585_v11, %v388_v37  ;;  %v668_v39 = vpop.f32.mrb[10].mxu1 }
 0x1d2   :  { %v391_v40 = vpop.f32.mrb[11].mxu1  ;;  %v881_v43 = vadd.f32 %v668_v39, %v585_v11 }
 0x1d3   :  { %v875_v41 = vadd.f32 %v585_v11, %v391_v40  ;;  %427 = vmax.xlane.f32.xlu0 %v873_v38 }
 0x1d5   :  { %429 = vmax.xlane.f32.xlu1 %v875_v41 }
 0x1d7   :  { %431 = vmax.xlane.f32.xlu0 %v878_v42 }
 0x1d9   :  { %433 = vmax.xlane.f32.xlu1 %v881_v43 }
 0x247   :  { %v408_v44 = vpop.xlane.xlu1 %407 }
 0x248   :  { %v437_v45 = vsub.f32 %v349_v13, %v408_v44  ;;  %v404_v46 = vpop.xlane.xlu0 %403 }
 0x249   :  { %v435_v47 = vsub.f32 %v341_v15, %v404_v46 }
 0x24a   :  { %v455_v48 = vmul.f32 1.442695, %v437_v45 }
 0x24b   :  { %v451_v49 = vmul.f32 1.442695, %v435_v47  ;;  %v410_v50 = vpop.xlane.xlu1 %409 }
 0x24c   :  { %702 = vpow2.f32 %v455_v48  ;;  %v438_v51 = vsub.f32 %v352_v18, %v410_v50  ;;  %v406_v52 = vpop.xlane.xlu0 %405 }
 0x24d   :  { %v436_v53 = vsub.f32 %v344_v19, %v406_v52  ;;  %704 = vpow2.f32 %v451_v49 }
 0x24e   :  { %v457_v54 = vmul.f32 1.442695, %v438_v51 }
 0x24f   :  { %v453_v55 = vmul.f32 1.442695, %v436_v53 }
 0x250   :  { %706 = vpow2.f32 %v457_v54  ;;  %v416_v56 = vpop.xlane.xlu0 %415 }
 0x251   :  { %v441_v57 = vsub.f32 %v365_v21, %v416_v56  ;;  %v418_v58 = vpop.xlane.xlu1 %417  ;;  %708 = vpow2.f32 %v453_v55 }
 0x252   :  { %v442_v59 = vsub.f32 %v368_v24, %v418_v58 }
 0x253   :  { %v463_v60 = vmul.f32 1.442695, %v441_v57 }
 0x254   :  { %v465_v61 = vmul.f32 1.442695, %v442_v59  ;;  %v412_v62 = vpop.xlane.xlu0 %411 }
 0x255   :  { %710 = vpow2.f32 %v463_v60  ;;  %v439_v63 = vsub.f32 %v357_v26, %v412_v62  ;;  %v414_v0 = vpop.xlane.xlu1 %413 }
 0x256   :  { %v885_v1 = vpop.eup %702  ;;  %v440_v2 = vsub.f32 %v360_v27, %v414_v0  ;;  %712 = vpow2.f32 %v465_v61 }
 0x257   :  { %v459_v3 = vmul.f32 1.442695, %v439_v63  ;;  %487 = vadd.xlane.f32.xlu0 %v885_v1  ;;  %v888_v6 = vpop.eup %704 }
 0x258   :  { %v461_v4 = vmul.f32 1.442695, %v440_v2  ;;  %v424_v5 = vpop.xlane.xlu0 %423 }
 0x259   :  { %714 = vpow2.f32 %v459_v3  ;;  %v445_v7 = vsub.f32 %v861_v29, %v424_v5  ;;  %v426_v8 = vpop.xlane.xlu1 %425 }
 0x25a   :  { %v891_v9 = vpop.eup %706  ;;  %v446_v10 = vsub.f32 %v863_v32, %v426_v8  ;;  %716 = vpow2.f32 %v461_v4 }
 0x25b   :  { %v471_v11 = vmul.f32 1.442695, %v445_v7  ;;  %489 = vadd.xlane.f32.xlu1 %v891_v9  ;;  %483 = vadd.xlane.f32.xlu0 %v888_v6  ;;  %v897_v16 = vpop.eup %708 }
 0x25c   :  { %v473_v12 = vmul.f32 1.442695, %v446_v10  ;;  %v420_v13 = vpop.xlane.xlu0 %419 }
 0x25d   :  { %718 = vpow2.f32 %v471_v11  ;;  %v443_v14 = vsub.f32 %v867_v34, %v420_v13  ;;  %v422_v15 = vpop.xlane.xlu1 %421 }
 0x25e   :  { %v444_v17 = vsub.f32 %v869_v35, %v422_v15  ;;  %720 = vpow2.f32 %v473_v12 }
 0x25f   :  { %v900_v18 = vpop.eup %710  ;;  %v467_v19 = vmul.f32 1.442695, %v443_v14  ;;  %485 = vadd.xlane.f32.xlu1 %v897_v16 }
 0x260   :  { %v469_v20 = vmul.f32 1.442695, %v444_v17  ;;  %495 = vadd.xlane.f32.xlu0 %v900_v18  ;;  %v428_v21 = vpop.xlane.xlu0 %427  ;;  %v905_v23 = vpop.eup %712 }
 0x261   :  { %722 = vpow2.f32 %v467_v19  ;;  %v447_v22 = vsub.f32 %v873_v38, %v428_v21 }
 0x262   :  { %v430_v24 = vpop.xlane.xlu1 %429  ;;  %724 = vpow2.f32 %v469_v20 }
 0x263   :  { %v907_v25 = vpop.eup %714  ;;  %v475_v26 = vmul.f32 1.442695, %v447_v22  ;;  %v448_v27 = vsub.f32 %v875_v41, %v430_v24  ;;  %497 = vadd.xlane.f32.xlu1 %v905_v23 }
 0x264   :  { %491 = vadd.xlane.f32.xlu0 %v907_v25  ;;  %v432_v28 = vpop.xlane.xlu0 %431  ;;  %v913_v31 = vpop.eup %716 }
 0x265   :  { %726 = vpow2.f32 %v475_v26  ;;  %v477_v29 = vmul.f32 1.442695, %v448_v27  ;;  %v449_v30 = vsub.f32 %v878_v42, %v432_v28 }
 0x266   :  { %v434_v32 = vpop.xlane.xlu1 %433 }
 0x267   :  { %v915_v33 = vpop.eup %718  ;;  %728 = vpow2.f32 %v477_v29  ;;  %v479_v34 = vmul.f32 1.442695, %v449_v30  ;;  %v450_v35 = vsub.f32 %v881_v43, %v434_v32  ;;  %493 = vadd.xlane.f32.xlu1 %v913_v31 }
 0x268   :  { %503 = vadd.xlane.f32.xlu0 %v915_v33  ;;  %v920_v37 = vpop.eup %720 }
 0x269   :  { %730 = vpow2.f32 %v479_v34  ;;  %v481_v36 = vmul.f32 1.442695, %v450_v35 }
 0x26b   :  { %v922_v38 = vpop.eup %722  ;;  %732 = vpow2.f32 %v481_v36  ;;  %505 = vadd.xlane.f32.xlu1 %v920_v37 }
 0x26c   :  { %499 = vadd.xlane.f32.xlu0 %v922_v38  ;;  %v926_v39 = vpop.eup %724 }
 0x26f   :  { %v928_v40 = vpop.eup %726  ;;  %501 = vadd.xlane.f32.xlu1 %v926_v39 }
 0x270   :  { %507 = vadd.xlane.f32.xlu0 %v928_v40 }
 0x271   :  { %v932_v41 = vpop.eup %728 }
 0x273   :  { %v934_v42 = vpop.eup %730  ;;  %509 = vadd.xlane.f32.xlu1 %v932_v41 }
 0x274   :  { %511 = vadd.xlane.f32.xlu0 %v934_v42 }
 0x275   :  { %v938_v43 = vpop.eup %732 }
 0x277   :  { %513 = vadd.xlane.f32.xlu1 %v938_v43 }
 0x2e4   :  { %v488_v44 = vpop.xlane.xlu0 %487 }
 0x2e5   :  { %734 = vrcp.f32 %v488_v44 }
 0x2e8   :  { %v490_v45 = vpop.xlane.xlu1 %489  ;;  %v484_v46 = vpop.xlane.xlu0 %483 }
 0x2e9   :  { %736 = vrcp.f32 %v490_v45 }
 0x2ea   :  { %738 = vrcp.f32 %v484_v46 }
 0x2ec   :  { %v486_v47 = vpop.xlane.xlu1 %485 }
 0x2ed   :  { %740 = vrcp.f32 %v486_v47  ;;  %v496_v48 = vpop.xlane.xlu0 %495 }
 0x2ee   :  { %742 = vrcp.f32 %v496_v48 }
 0x2ef   :  { %v735_v49 = vpop.eup %734 }
 0x2f0   :  { %v520_v50 = vmul.f32 %v735_v49, %v885_v1  ;;  %v498_v51 = vpop.xlane.xlu1 %497 }
 0x2f1   :  { %744 = vrcp.f32 %v498_v51  ;;  %v492_v52 = vpop.xlane.xlu0 %491 }
 0x2f2   :  { %550 = vst.msk [vmem:[%s1026_s5 + $0x10] sm:$0xff] %vm547_vm2, %v520_v50  ;;  %746 = vrcp.f32 %v492_v52 }
 0x2f3   :  { %v737_v53 = vpop.eup %736 }
 0x2f4   :  { %v739_v54 = vpop.eup %738  ;;  %v522_v55 = vmul.f32 %v737_v53, %v891_v9  ;;  %v494_v56 = vpop.xlane.xlu1 %493 }
 0x2f5   :  { %v516_v57 = vmul.f32 %v739_v54, %v888_v6  ;;  %748 = vrcp.f32 %v494_v56  ;;  %v504_v58 = vpop.xlane.xlu0 %503 }
 0x2f6   :  { %551 = vst.msk [vmem:[%s1026_s5 + $0x18] sm:$0xff] %vm547_vm2, %v522_v55  ;;  %750 = vrcp.f32 %v504_v58 }
 0x2f7   :  { %v741_v59 = vpop.eup %740  ;;  %548 = vst.msk [vmem:[%s1026_s5] sm:$0xff] %vm547_vm2, %v516_v57 }
 0x2f8   :  { %v743_v60 = vpop.eup %742  ;;  %v518_v61 = vmul.f32 %v741_v59, %v897_v16  ;;  %v506_v62 = vpop.xlane.xlu1 %505 }
 0x2f9   :  { %v528_v63 = vmul.f32 %v743_v60, %v900_v18  ;;  %752 = vrcp.f32 %v506_v62  ;;  %v500_v0 = vpop.xlane.xlu0 %499 }
 0x2fa   :  { %549 = vst.msk [vmem:[%s1026_s5 + $0x8] sm:$0xff] %vm547_vm2, %v518_v61  ;;  %754 = vrcp.f32 %v500_v0 }
 0x2fb   :  { %v745_v1 = vpop.eup %744  ;;  %554 = vst.msk [vmem:[%s1026_s5 + $0x30] sm:$0xff] %vm547_vm2, %v528_v63 }
 0x2fc   :  { %v747_v2 = vpop.eup %746  ;;  %v530_v3 = vmul.f32 %v745_v1, %v905_v23  ;;  %v502_v4 = vpop.xlane.xlu1 %501 }
 0x2fd   :  { %v524_v5 = vmul.f32 %v747_v2, %v907_v25  ;;  %756 = vrcp.f32 %v502_v4  ;;  %v508_v6 = vpop.xlane.xlu0 %507 }
 0x2fe   :  { %555 = vst.msk [vmem:[%s1026_s5 + $0x38] sm:$0xff] %vm547_vm2, %v530_v3  ;;  %758 = vrcp.f32 %v508_v6 }
 0x2ff   :  { %v749_v7 = vpop.eup %748  ;;  %552 = vst.msk [vmem:[%s1026_s5 + $0x20] sm:$0xff] %vm547_vm2, %v524_v5 }
 0x300   :  { %v751_v8 = vpop.eup %750  ;;  %v526_v9 = vmul.f32 %v749_v7, %v913_v31  ;;  %v510_v10 = vpop.xlane.xlu1 %509 }
 0x301   :  { %v536_v11 = vmul.f32 %v751_v8, %v915_v33  ;;  %760 = vrcp.f32 %v510_v10  ;;  %v512_v12 = vpop.xlane.xlu0 %511 }
 0x302   :  { %553 = vst.msk [vmem:[%s1026_s5 + $0x28] sm:$0xff] %vm547_vm2, %v526_v9  ;;  %762 = vrcp.f32 %v512_v12 }
 0x303   :  { %v753_v13 = vpop.eup %752  ;;  %558 = vst.msk [vmem:[%s1026_s5 + $0x50] sm:$0xff] %vm547_vm2, %v536_v11 }
 0x304   :  { %v755_v14 = vpop.eup %754  ;;  %v538_v15 = vmul.f32 %v753_v13, %v920_v37  ;;  %v514_v16 = vpop.xlane.xlu1 %513 }
 0x305   :  { %v532_v17 = vmul.f32 %v755_v14, %v922_v38  ;;  %764 = vrcp.f32 %v514_v16 }
 0x306   :  { %559 = vst.msk [vmem:[%s1026_s5 + $0x58] sm:$0xff] %vm547_vm2, %v538_v15 }
 0x307   :  { %v757_v18 = vpop.eup %756  ;;  %556 = vst.msk [vmem:[%s1026_s5 + $0x40] sm:$0xff] %vm547_vm2, %v532_v17 }
 0x308   :  { %v759_v19 = vpop.eup %758  ;;  %v534_v20 = vmul.f32 %v757_v18, %v926_v39 }
 0x309   :  { %v540_v21 = vmul.f32 %v759_v19, %v928_v40 }
 0x30a   :  { %557 = vst.msk [vmem:[%s1026_s5 + $0x48] sm:$0xff] %vm547_vm2, %v534_v20 }
 0x30b   :  { %v761_v22 = vpop.eup %760  ;;  %560 = vst.msk [vmem:[%s1026_s5 + $0x60] sm:$0xff] %vm547_vm2, %v540_v21 }
 0x30c   :  { %v763_v23 = vpop.eup %762  ;;  %v542_v24 = vmul.f32 %v761_v22, %v932_v41 }
 0x30d   :  { %v544_v25 = vmul.f32 %v763_v23, %v934_v42 }
 0x30e   :  { %561 = vst.msk [vmem:[%s1026_s5 + $0x68] sm:$0xff] %vm547_vm2, %v542_v24 }
 0x30f   :  { %v765_v26 = vpop.eup %764  ;;  %562 = vst.msk [vmem:[%s1026_s5 + $0x70] sm:$0xff] %vm547_vm2, %v544_v25 }
 0x310   :  { %v546_v27 = vmul.f32 %v765_v26, %v938_v43 }
 0x312   :  { %563 = vst.msk [vmem:[%s1026_s5 + $0x78] sm:$0xff] %vm547_vm2, %v546_v27 }

</bundles_post_ra>
